<compile_context>
chip_gen: v7x
topology: tpu7x:2x2x1
jax: 0.10.0
libtpu: 0.0.40
codegen_flags: <defaults>
</compile_context>

<pallas_src>
import jax
import jax.numpy as jnp
from jax import lax
from jax.experimental import pallas as pl
from jax.experimental.pallas import tpu as pltpu


def _round_up(a, b):
    return (a + b - 1) // b * b


def _vmem_capacity_bytes():
    """Physical VMEM per TensorCore; conservative (v7x = 64 MiB) fallback."""
    try:
        info = pltpu.get_tpu_info()
        cap = int(getattr(info, "vmem_capacity_bytes", 0))
        if cap > 0:
            return cap
    except Exception:
        pass
    return 64 << 20


def _expert_vmem_use(tm, tf, D, x_b, w_b):
    """Rough per-step VMEM footprint of the expert kernel (bytes)."""
    return (2 * tm * D * x_b                       # x tile, double-buffered
            + 2 * tm * D * x_b                     # out tile, double-buffered
            + 2 * (2 * D * tf + tf + D) * w_b      # w1, w2, b1, b2 (x2 buffers)
            + 2 * tm * 4                           # prob tile (f32)
            + tm * D * 4                           # f32 accumulator scratch
            + tm * tf * 4)                         # f32 hidden intermediate


def _pick_tiles(T, D, F, x_dtype, w_dtype, vmem_cap, token_tile, ff_tile):
    """Pick (tm, tf): tm is the roofline lever, tf only affects VMEM."""
    x_b = jnp.dtype(x_dtype).itemsize
    w_b = jnp.dtype(w_dtype).itemsize
    # minimum sublane tile depends on activation dtype (f32: 8, bf16: 16, i8: 32)
    tm_min = {1: 32, 2: 16}.get(x_b, 8)
    budget = int(vmem_cap * 0.8)

    tf_cands = sorted(
        {F} | {c for c in (2048, 1024, 512, 256, 128) if c < F and F % c == 0},
        reverse=True)

    if token_tile is not None:
        tm = token_tile
    else:
        # 128-MiB chips (v5e/v6e): big tiles; 64-MiB v7x: 512.
        big_tm = 1024 if vmem_cap >= (96 << 20) else 512
        tm = big_tm if T >= big_tm else max(tm_min, _round_up(T, tm_min))

    if ff_tile is not None:
        return tm, ff_tile

    tm_floor = max(tm_min, 256)
    while True:
        for tf in tf_cands:
            if _expert_vmem_use(tm, tf, D, x_b, w_b) <= budget:
                return tm, tf
        if tm <= tm_floor or token_tile is not None:
            return tm, tf_cands[-1]
        tm = max(tm_floor, tm // 2)


# ------------------------------ Router kernel ------------------------------
def _router_kernel(x_ref, wr_ref, logits_ref):
    # Lane-dense logits only (E padded to a multiple of 128 by the wrapper).
    logits_ref[...] = jnp.dot(x_ref[...], wr_ref[...],
                              preferred_element_type=jnp.float32)


def router_logits_pallas(x, wr, tm):
    T, D = x.shape
    E_pad = wr.shape[1]
    assert T % tm == 0
    return pl.pallas_call(
        _router_kernel,
        grid=(T // tm,),
        in_specs=[
            pl.BlockSpec((tm, D), lambda i: (i, 0)),
            pl.BlockSpec((D, E_pad), lambda i: (0, 0)),
        ],
        out_specs=pl.BlockSpec((tm, E_pad), lambda i: (i, 0)),
        out_shape=jax.ShapeDtypeStruct((T, E_pad), jnp.float32),
        compiler_params=pltpu.CompilerParams(dimension_semantics=("parallel",)),
    )(x, wr)


# --------------------- Grouped expert FFN kernel (top-1) --------------------
def _expert_ffn_kernel(tile_expert_ref, tile_valid_ref, x_ref, prob_ref,
                       w1_ref, b1_ref, w2_ref, b2_ref, o_ref, acc_ref):
    del tile_expert_ref  # consumed by the index_maps only
    i = pl.program_id(0)
    j = pl.program_id(1)
    valid = tile_valid_ref[i] > 0          # skip fully-padded tiles

    @pl.when(jnp.logical_and(valid, j == 0))
    def _():
        acc_ref[...] = jnp.zeros_like(acc_ref)

    @pl.when(valid)
    def _():
        w2 = w2_ref[0]                                                 # (TF, D)
        h = jnp.maximum(
            jnp.dot(x_ref[...], w1_ref[0], preferred_element_type=jnp.float32)
            + b1_ref[0], 0.0)                                          # (TM, TF)
        acc_ref[...] += jnp.dot(h.astype(w2.dtype), w2,
                                preferred_element_type=jnp.float32)

    @pl.when(jnp.logical_and(valid, j == pl.num_programs(1) - 1))
    def _():
        # fused top-1 routing-prob scaling in the epilogue (free VPU filler)
        o_ref[...] = ((acc_ref[...] + b2_ref[0]) * prob_ref[...]).astype(o_ref.dtype)


def expert_ffn(tile_expert, tile_valid, x_sorted, prob_sorted, w1, b1, w2, b2,
               *, tm, tf, vmem_cap):
    P, D = x_sorted.shape
    E, _, F = w1.shape
    assert P % tm == 0 and F % tf == 0
    n_tiles = P // tm

    flops = 4 * P * D * F
    w_bytes = jnp.dtype(w1.dtype).itemsize
    x_bytes = jnp.dtype(x_sorted.dtype).itemsize
    bytes_accessed = (2 * P * D * x_bytes + P * 4
                      + n_tiles * (2 * D * F + D + F) * w_bytes)

    vmem_limit = max(32 << 20, min(int(vmem_cap * 0.9), 128 << 20))

    return pl.pallas_call(
        _expert_ffn_kernel,
        out_shape=jax.ShapeDtypeStruct((P, D), x_sorted.dtype),
        grid_spec=pltpu.PrefetchScalarGridSpec(
            num_scalar_prefetch=2,                 # tile->expert, tile->valid (SMEM)
            grid=(n_tiles, F // tf),
            in_specs=[
                pl.BlockSpec((tm, D), lambda i, j, te, tv: (i, 0)),            # x
                pl.BlockSpec((tm, 1), lambda i, j, te, tv: (i, 0)),            # prob
                pl.BlockSpec((1, D, tf), lambda i, j, te, tv: (te[i], 0, j)),  # w1[e]
                pl.BlockSpec((1, 1, tf), lambda i, j, te, tv: (te[i], 0, j)),  # b1[e]
                pl.BlockSpec((1, tf, D), lambda i, j, te, tv: (te[i], j, 0)),  # w2[e]
                pl.BlockSpec((1, 1, D), lambda i, j, te, tv: (te[i], 0, 0)),   # b2[e]
            ],
            out_specs=pl.BlockSpec((tm, D), lambda i, j, te, tv: (i, 0)),
            scratch_shapes=[pltpu.VMEM((tm, D), jnp.float32)],                 # acc
        ),
        compiler_params=pltpu.CompilerParams(
            dimension_semantics=("parallel", "arbitrary"),
            vmem_limit_bytes=vmem_limit),
        cost_estimate=pl.CostEstimate(
            flops=flops, transcendentals=0, bytes_accessed=bytes_accessed),
    )(tile_expert, tile_valid, x_sorted, prob_sorted, w1, b1, w2, b2)


# -------------------------------- Full layer --------------------------------
def moe_layer_forward(hidden_states, wr, w1, b1, w2, b2, *,
                      token_tile=None, ff_tile=None):
    original_shape = hidden_states.shape
    D, E = wr.shape
    F = w1.shape[2]
    x = hidden_states.reshape(-1, D)
    T = x.shape[0]

    vmem_cap = _vmem_capacity_bytes()
    tm, tf = _pick_tiles(T, D, F, x.dtype, w1.dtype, vmem_cap, token_tile, ff_tile)

    # ------------------------- router (token-tiled) -------------------------
    tm_r = min(tm, 256)
    E_pad = _round_up(E, 128)                       # lane-dense logits output
    wr_p = wr if E_pad == E else jnp.pad(wr, ((0, 0), (0, E_pad - E)))
    t_pad = _round_up(T, tm_r)
    x_r = x if t_pad == T else jnp.pad(x, ((0, t_pad - T), (0, 0)))
    router_logits = router_logits_pallas(x_r, wr_p, tm_r)[:T, :E]

    # top-1 prob / argmax are trivial reductions -- do them exactly in XLA
    m = jnp.max(router_logits, axis=-1, keepdims=True)
    prob_sel = 1.0 / jnp.sum(jnp.exp(router_logits - m), axis=-1, keepdims=True)
    expert_index = jnp.argmax(router_logits, axis=-1).astype(jnp.int32)

    # ------------- grouped dispatch: sort + pad tokens by expert ------------
    one_hot = (expert_index[:, None] == jnp.arange(E, dtype=jnp.int32)[None, :]
               ).astype(jnp.int32)                                     # (T, E)
    sizes = jnp.sum(one_hot, axis=0)                # tokens per expert
    padded_sizes = ((sizes + tm - 1) // tm) * tm    # group padded to tile mult
    padded_ends = jnp.cumsum(padded_sizes)
    padded_starts = padded_ends - padded_sizes
    rank = jnp.cumsum(one_hot, axis=0) - one_hot    # position within own group
    rank_t = jnp.take_along_axis(rank, expert_index[:, None], axis=1)[:, 0]
    dest = padded_starts[expert_index] + rank_t     # (T,) destination rows

    n_tiles = (T + tm - 1) // tm + E                # static bound on padded tiles
    P = n_tiles * tm
    # inverse permutation -> GATHER activations (cheaper than (P,D) scatter);
    # rows not hit by any token just duplicate row 0 and are discarded later.
    src = jnp.zeros((P,), jnp.int32).at[dest].set(jnp.arange(T, dtype=jnp.int32))
    x_sorted = jnp.take(x, src, axis=0)             # (P, D)
    prob_sorted = jnp.take(prob_sel, src, axis=0)   # (P, 1)

    tile_starts = jnp.arange(n_tiles, dtype=jnp.int32) * tm
    tile_expert = jnp.clip(
        jnp.searchsorted(padded_ends, tile_starts, side="right"),
        0, E - 1).astype(jnp.int32)                 # expert owning each tile
    tile_valid = (tile_starts <
                  padded_starts[tile_expert] + sizes[tile_expert]).astype(jnp.int32)

    # --------------------------- expert FFN kernel --------------------------
    y_sorted = expert_ffn(tile_expert, tile_valid, x_sorted, prob_sorted,
                          w1, b1, w2, b2, tm=tm, tf=tf, vmem_cap=vmem_cap)
    y = jnp.take(y_sorted, dest, axis=0)            # back to token order (scaled)

    out = y.astype(hidden_states.dtype).reshape(original_shape)
    return out, (router_logits, expert_index)


# -------------------------------- Reference ---------------------------------
def _reference(hidden_states, wr, w1, b1, w2, b2):
    original_shape = hidden_states.shape
    d_model = wr.shape[0]
    x = hidden_states.reshape(-1, d_model)
    logits = x @ wr
    probs = jax.nn.softmax(logits, axis=-1)
    idx = jnp.argmax(probs, axis=-1)
    prob_sel = jnp.max(probs, axis=-1, keepdims=True)
    h = jnp.maximum(jnp.einsum("td,edf->tef", x, w1) + b1[None, :, 0, :], 0.0)
    y = jnp.einsum("tef,efd->ted", h, w2) + b2[None, :, 0, :]
    y_sel = jnp.take_along_axis(y, idx[:, None, None], axis=1)[:, 0, :]
    out = (prob_sel * y_sel).reshape(original_shape)
    return out, (logits, idx)


if __name__ == "__main__":
    batch, seq, d_model = 2, 8, 32
    num_experts, d_ff = 8, 64

    key = jax.random.PRNGKey(0)
    k_x, k_r, k_w1, k_b1, k_w2, k_b2 = jax.random.split(key, 6)

    hidden_states = jax.random.normal(k_x, (batch, seq, d_model), jnp.float32)
    wr = jax.random.normal(k_r, (d_model, num_experts), jnp.float32) * 0.1
    w1 = jax.random.normal(k_w1, (num_experts, d_model, d_ff), jnp.float32) * 0.1
    b1 = jax.random.normal(k_b1, (num_experts, 1, d_ff), jnp.float32) * 0.1
    w2 = jax.random.normal(k_w2, (num_experts, d_ff, d_model), jnp.float32) * 0.1
    b2 = jax.random.normal(k_b2, (num_experts, 1, d_model), jnp.float32) * 0.1

    out, (logits, expert_index) = moe_layer_forward(hidden_states, wr, w1, b1, w2, b2)
    jax.block_until_ready(out)

    ref_out, (ref_logits, ref_idx) = _reference(hidden_states, wr, w1, b1, w2, b2)
    assert out.shape == hidden_states.shape
    assert jnp.allclose(out, ref_out, atol=1e-3, rtol=1e-3)
    assert jnp.allclose(logits, ref_logits, atol=1e-4, rtol=1e-4)
    assert jnp.array_equal(expert_index, ref_idx.astype(jnp.int32))

    print("KERNEL_OK")
</pallas_src>

<mosaic_0001>
module attributes {stable_mosaic.version = 11 : i64} {
  func.func @_router_kernel(%arg0: i32, %arg1: memref<16x32xf32, #tpu.memory_space<vmem>>, %arg2: memref<32x128xf32, #tpu.memory_space<vmem>>, %arg3: memref<16x128xf32, #tpu.memory_space<vmem>>) attributes {dimension_semantics = [#tpu.dimension_semantics<parallel>], iteration_bounds = array<i64: 1>, scalar_prefetch = 0 : i64, scratch_operands = 0 : i64, tpu.core_type = #tpu.core_type<tc>, window_params = [{transform_indices = @transform_0, window_bounds = array<i64: 16, 32>}, {pipeline_mode = #tpu.pipeline_mode<synchronous>, transform_indices = @transform_1, window_bounds = array<i64: 32, 128>}, {transform_indices = @transform_2, window_bounds = array<i64: 16, 128>}]} {
    %c0 = arith.constant 0 : index
    %c0_0 = arith.constant 0 : index
    %0 = vector.load %arg1[%c0, %c0_0] : memref<16x32xf32, #tpu.memory_space<vmem>>, vector<16x32xf32>
    %c0_1 = arith.constant 0 : index
    %c0_2 = arith.constant 0 : index
    %1 = vector.load %arg2[%c0_1, %c0_2] : memref<32x128xf32, #tpu.memory_space<vmem>>, vector<32x128xf32>
    %cst = arith.constant dense<0.000000e+00> : vector<16x128xf32>
    %2 = tpu.matmul %0, %1, %cst {dimension_numbers = #tpu.dot_dimension_numbers<[1], [0], [0], [1], [0, 0, 1, 1], [], []>} : vector<16x32xf32>, vector<32x128xf32>, vector<16x128xf32> -> vector<16x128xf32>
    %c0_3 = arith.constant 0 : index
    %c0_4 = arith.constant 0 : index
    %3 = vector.load %arg3[%c0_3, %c0_4] : memref<16x128xf32, #tpu.memory_space<vmem>>, vector<16x128xf32>
    tpu.vector_store %arg3[%c0_3, %c0_4], %2 {strides = array<i32>} : memref<16x128xf32, #tpu.memory_space<vmem>>, vector<16x128xf32>,
    return
  }
  func.func @transform_0(%arg0: i32) -> (i32, i32) {
    %c0_i32 = arith.constant 0 : i32
    %c0_i32_0 = arith.constant 0 : i32
    return %arg0, %c0_i32 : i32, i32
  }
  func.func @transform_1(%arg0: i32) -> (i32, i32) {
    %c0_i32 = arith.constant 0 : i32
    %c0_i32_0 = arith.constant 0 : i32
    %c0_i32_1 = arith.constant 0 : i32
    return %c0_i32, %c0_i32_0 : i32, i32
  }
  func.func @transform_2(%arg0: i32) -> (i32, i32) {
    %c0_i32 = arith.constant 0 : i32
    %c0_i32_0 = arith.constant 0 : i32
    return %arg0, %c0_i32 : i32, i32
  }
}

</mosaic_0001>

<bundles_post_ra>
// kernel: tpu_custom_call.1
= control target key start
LH: loop header
LB: loop body
LE: loop exit
PB: predicated region body
PF: predicated region fallthrough
CT: control target
= control target key end

     0   :  { %7 = vsyncpa [#allocation3], 0  ;;  %s317_s0 = inlined_call_operand.hbm [shape: f32[16,32], index: 0, kind: input, shape index: {}]   ;;  %s318_s1 = inlined_call_operand.hbm [shape: f32[32,128], index: 1, kind: input, shape index: {}]   ;;  %s319_s2 = inlined_call_operand.hbm [shape: f32[16,128], index: 2, kind: output, shape index: {}]  }
   0x1   :  { %8 = vsyncpa [#allocation6], 0 }
   0x2   :  { %9 = vsyncpa [#allocation4], 0  ;;  %s252_s9 = smov [#allocation2]   ;;  %s180_s13 = scalar_lea.hbm %s317_s0, 256 }
   0x3   :  { %s15_s10 = sshll.u32 %s252_s9, 4  ;;  %p181_p0 = scmp.ne.s32.totalorder %s317_s0, %s180_s13  ;;  %s16_s10 = int_to_ptr.vmem [resolvable:$true] %s15_s10 }
   0x4   :  { %p184_p1 = scmp.lt.u32.totalorder %s180_s13, %s317_s0 }
   0x6   :  { %p186_p2 = pnand %p184_p1, %p181_p0 }
   0x8   :  { %189 = shalt.err (!%p186_p2)
}
   0x9   :  { %s190_s18 = scalar_lea.vmem %s16_s10, 256  ;;  %p195_p4 = scmp.lt.s32.totalorder %s16_s10, %s16_s10 }
   0xa   :  { %p191_p3 = scmp.ne.s32.totalorder %s16_s10, %s190_s18  ;;  %p196_p5 = scmp.lt.s32.totalorder %s190_s18, %s190_s18 }
   0xc   :  { %p197_p6 = por %p196_p5, %p195_p4 }
   0xe   :  { %p198_p7 = pnand %p197_p6, %p191_p3 }
  0x10   :  { %201 = shalt.err (!%p198_p7)
}
  0x11   :  { %s253_s19 = smov 128   ;;  %s254_s20 = smov 8  }
  0x12   :  { %21 = dma.hbm_to_vmem [thread:$0]  %s317_s0, 256, %s16_s10, [#allocation3], %s253_s19, %s253_s19, %s254_s20  }
  0x13   :  { %s255_s23 = smov [#allocation5]   ;;  %s202_s27 = scalar_lea.hbm %s318_s1, 512 }
  0x14   :  { %s27_s24 = sshll.u32 %s255_s23, 4  ;;  %p203_p8 = scmp.ne.s32.totalorder %s318_s1, %s202_s27  ;;  %s28_s24 = int_to_ptr.vmem [resolvable:$true] %s27_s24 }
  0x15   :  { %p206_p9 = scmp.lt.u32.totalorder %s202_s27, %s318_s1 }
  0x17   :  { %p208_p10 = pnand %p206_p9, %p203_p8 }
  0x19   :  { %211 = shalt.err (!%p208_p10)
}
  0x1a   :  { %s212_s4 = scalar_lea.vmem %s28_s24, 512  ;;  %p217_p12 = scmp.lt.s32.totalorder %s28_s24, %s28_s24 }
  0x1b   :  { %p213_p11 = scmp.ne.s32.totalorder %s28_s24, %s212_s4  ;;  %p218_p13 = scmp.lt.s32.totalorder %s212_s4, %s212_s4 }
  0x1d   :  { %p219_p0 = por %p218_p13, %p217_p12 }
  0x1f   :  { %p220_p1 = pnand %p219_p0, %p213_p11 }
  0x21   :  { %223 = shalt.err (!%p220_p1)
}
  0x22   :  { %33 = dma.hbm_to_vmem [thread:$0]  %s318_s1, 512, %s28_s24, [#allocation6], %s253_s19, %s253_s19, %s254_s20  }
  0x23   :  { %246 = dma.done.wait [#allocation3], 256  }
  0x24   :  { %247 = vsyncadd [#allocation3], 4294967040 }
  0x25   :  { %248 = dma.done.wait [#allocation6], 512  }
  0x26   :  { %249 = vsyncadd [#allocation6], 4294966784  ;;  %vm46_vm0 = vcmask 261120   ;;  %v42_v0 = vld [vmem:[#allocation5] sm:$0xff]  ;;  %v43_v1 = vld [vmem:[#allocation5 + $0x8] sm:$0xff]  ;;  %s256_s1 = smov [#allocation7]  }
  0x27   :  { %v44_v2 = vld [vmem:[#allocation5 + $0x10] sm:$0xff]  ;;  %v167_v3 = vpack.c.bf16 %v43_v1, %v42_v0  ;;  %v45_v4 = vld [vmem:[#allocation5 + $0x18] sm:$0xff]  ;;  %s135_s6 = sshll.u32 %s256_s1, 4  ;;  %s136_s6 = int_to_ptr.vmem [resolvable:$true] %s135_s6 }
  0x28   :  { %v40_v5 = vld [vmem:[#allocation2] sm:$0xff]  ;;  %v171_v6 = vpack.c.bf16 %v45_v4, %v44_v2  ;;  %v41_v7 = vld [vmem:[#allocation2 + $0x8] sm:$0xff]  ;;  %s224_s7 = scalar_lea.vmem %s136_s6, 256  ;;  %p229_p3 = scmp.lt.s32.totalorder %s136_s6, %s136_s6 }
  0x29   :  { %164 = vmatprep.mubr.msk.f32.mxu0 %vm46_vm0, %v40_v5  ;;  %168 = vmatprep.subr.bf16.mxu0 %v167_v3  ;;  %p225_p2 = scmp.ne.s32.totalorder %s136_s6, %s224_s7  ;;  %p230_p4 = scmp.lt.s32.totalorder %s224_s7, %s224_s7 }
  0x2a   :  { %170 = vmatpush3.bf16.msra.mxu0 %v167_v3 }
  0x2b   :  { %172 = vmatprep.subr.bf16.mxu0 %v171_v6  ;;  %p231_p5 = por %p230_p4, %p229_p3 }
  0x2d   :  { %p232_p6 = pnand %p231_p5, %p225_p2 }
  0x2e   :  { %174 = vmatpush3.bf16.msra.mxu0 %v171_v6 }
  0x31   :  { %165 = vmatmul.mubr.msk.f32.vlgmr.msra.gmra.mrb[0].mxu0 %vm46_vm0, %v41_v7 }
 0x104   :  { %v166_v8 = vpop.f32.mrb[0].mxu0 }
 0x105   :  { %129 = vst [vmem:[#allocation7 + $0x8] sm:$0xff] %v166_v8  ;;  %v119_v9 = vpop.f32.mrb[1].mxu0 }
 0x106   :  { %128 = vst [vmem:[#allocation7] sm:$0xff] %v119_v9 }
 0x107   :  { %235 = shalt.err (!%p232_p6)
}
 0x108   :  { %s236_s10 = scalar_lea.hbm %s319_s2, 256 }
 0x109   :  { %p237_p7 = scmp.ne.s32.totalorder %s319_s2, %s236_s10  ;;  %p240_p8 = scmp.lt.u32.totalorder %s236_s10, %s319_s2 }
 0x10b   :  { %p242_p9 = pnand %p240_p8, %p237_p7 }
 0x10d   :  { %245 = shalt.err (!%p242_p9)
}
 0x10e   :  { %141 = dma.vmem_to_hbm [thread:$0]  %s136_s6, 256, %s319_s2, [#allocation4], %s253_s19, %s253_s19, %s254_s20  }
 0x10f   :  { %250 = dma.done.wait [#allocation4], 256  }
 0x110   :  { %251 = vsyncadd [#allocation4], 4294967040 }
 0x111   :  { %145 = vsyncpa [#allocation3], 1 }
 0x112   :  { %146 = vsyncpa [#allocation6], 1 }
 0x113   :  { %147 = vsyncpa [#allocation4], 1 }

</bundles_post_ra>
